<compile_context>
chip_gen: v5e
topology: v5e:2x2
jax: 0.10.0
libtpu: 0.0.40
codegen_flags: <defaults>
</compile_context>

<pallas_src>
import math

import jax
import jax.numpy as jnp
from jax.experimental import pallas as pl
from jax.experimental.pallas import tpu as pltpu

_HAS_BUFFERED = hasattr(pl, "Buffered")


def _round_up(x, m):
    return ((x + m - 1) // m) * m


def _cdiv(a, b):
    return (a + b - 1) // b


def _pick_chunk(total, target):
    """Largest multiple of 128 that divides `total` (a multiple of 128) and is <= target."""
    q = total // 128
    best = 1
    for r in range(1, q + 1):
        if q % r == 0 and 128 * r <= target:
            best = r
    return 128 * best


def _tpu_generation():
    try:
        kind = jax.devices()[0].device_kind.lower()
    except Exception:
        return "default"
    if "v7" in kind:
        return "v7x"
    if "v6" in kind:
        return "v6e"
    if "v5" in kind and ("lite" in kind or "v5e" in kind):
        return "v5e"
    return "default"


# Per-generation tiling / VMEM policy.
_GEN_CONFIG = {
    # v5e: roofline ~240 FLOP/byte -> tile_m=256 suffices; don't burn VMEM.
    "v5e":     dict(tile_m=256, tile_k=512,  vmem_limit=96 * 2**20,  num_cores=1),
    # v6e: weight stream needs >=640 rows of intensity -> tile_m=768, tile_k=1024,
    #      and raise the VMEM request (physical 128 MiB).
    "v6e":     dict(tile_m=768, tile_k=1024, vmem_limit=100 * 2**20, num_cores=1),
    # v7x: per-TC balance ~310 FLOP/byte -> tile_m=512; only 64 MiB physical VMEM
    #      per TC so cap request at 48 MiB; 2 TensorCores share the M axis.
    "v7x":     dict(tile_m=512, tile_k=512,  vmem_limit=48 * 2**20,  num_cores=2),
    "default": dict(tile_m=256, tile_k=512,  vmem_limit=48 * 2**20,  num_cores=1),
}


def _make_resident_kernel(n_chunks, chunk):
    """Whole FFN for one M tile; W1/W2 fully resident in VMEM (no k grid axis).

    Hidden dim split into statically unrolled chunks so the MXU dot2 of chunk c
    overlaps the VPU bias/ReLU/cast of chunk c+1 and the f32 `h` stays small.
    """
    def kernel(x_ref, w1_ref, b1_ref, w2_ref, b2_ref, o_ref):
        x = x_ref[...]
        acc = jnp.zeros(o_ref.shape, jnp.float32)
        for c in range(n_chunks):
            lo, hi = c * chunk, (c + 1) * chunk
            h = jnp.dot(x, w1_ref[:, lo:hi], preferred_element_type=jnp.float32)
            h = jnp.maximum(h + b1_ref[:, lo:hi], 0.0)
            acc = acc + jnp.dot(h.astype(w2_ref.dtype), w2_ref[lo:hi, :],
                                preferred_element_type=jnp.float32)
        o_ref[...] = (acc + b2_ref[...]).astype(o_ref.dtype)
    return kernel


def _make_ktiled_kernel(n_chunks, chunk):
    """One (tile_m x tile_k) step of relu(x@W1+b1)@W2+b2, accumulated over k."""
    def kernel(x_ref, w1_ref, b1_ref, w2_ref, b2_ref, o_ref, acc_ref):
        k = pl.program_id(1)

        @pl.when(k == 0)
        def _():
            acc_ref[...] = jnp.zeros_like(acc_ref)

        x = x_ref[...]
        for c in range(n_chunks):
            lo, hi = c * chunk, (c + 1) * chunk
            h = jnp.dot(x, w1_ref[:, lo:hi], preferred_element_type=jnp.float32)
            h = jnp.maximum(h + b1_ref[:, lo:hi], 0.0)
            acc_ref[...] += jnp.dot(h.astype(w2_ref.dtype), w2_ref[lo:hi, :],
                                    preferred_element_type=jnp.float32)

        @pl.when(k == pl.num_programs(1) - 1)
        def _():
            o_ref[...] = (acc_ref[...] + b2_ref[...]).astype(o_ref.dtype)
    return kernel


class PositionWiseFFN:
    """Fused position-wise FFN: y = relu(x @ W1_t + b1) @ W2_t + b2.

    Weights are padded to lane-dense shapes and cast to the MXU compute dtype
    ONCE at construction (not per call). Two execution paths:
      * weights-resident (no k grid axis) when W1+W2 fit the per-generation
        VMEM budget -> weights DMA'd from HBM once per call;
      * K-tiled with an f32 VMEM accumulator otherwise -> bounded VMEM for
        very large hidden dims.
    """

    def __init__(self, w1_t, b1, w2_t, b2, *, compute_dtype=jnp.bfloat16,
                 weights_resident=None, tile_m=None, tile_k=None):
        cfg = _GEN_CONFIG[_tpu_generation()]
        self.compute_dtype = jnp.dtype(compute_dtype)
        cd = self.compute_dtype.itemsize
        self.sublane = 8 if cd == 4 else 16      # packed dtypes: 16 rows / vreg
        self.num_cores = cfg["num_cores"]
        self.vmem_limit = cfg["vmem_limit"]
        budget = int(0.8 * self.vmem_limit)      # headroom for Mosaic internals

        self.d_in, self.d_hid = w1_t.shape
        d_hid2, self.d_out = w2_t.shape
        assert d_hid2 == self.d_hid and b1.shape == (self.d_hid,) and b2.shape == (self.d_out,)

        self.d_in_p = _round_up(self.d_in, 128)
        self.d_out_p = _round_up(self.d_out, 128)
        self.d_hid_p = _round_up(self.d_hid, 128)

        self.tile_m = _round_up(tile_m if tile_m is not None else cfg["tile_m"],
                                self.sublane)
        cfg_tile_k = tile_k if tile_k is not None else cfg["tile_k"]

        # ---- weights-resident fast path feasibility -------------------------
        res_target = self.d_hid_p // 2 if self.d_hid_p >= 256 else self.d_hid_p
        self._res_chunk = _pick_chunk(self.d_hid_p, max(128, min(cfg_tile_k, res_target)))
        self._res_nchunks = self.d_hid_p // self._res_chunk
        wbuf = 1 if _HAS_BUFFERED else 2         # weights single-buffered if possible
        res_fp = (2 * self.tile_m * self.d_in_p * cd                       # x (dbl-buf)
                  + wbuf * (self.d_in_p * self.d_hid_p
                            + self.d_hid_p * self.d_out_p) * cd            # W1 + W2
                  + 3 * self.tile_m * self.d_out_p * 4                     # out dbl-buf + acc
                  + self.tile_m * self._res_chunk * 4                      # f32 h chunk
                  + 2 * (self.d_hid_p + self.d_out_p) * 4)                 # biases
        if weights_resident is None:
            self.weights_resident = res_fp <= budget
        else:
            self.weights_resident = bool(weights_resident)

        # ---- K-tiled fallback: tile_k divides d_hid_p, shrink to fit VMEM ----
        tk = _pick_chunk(self.d_hid_p, max(128, min(cfg_tile_k, self.d_hid_p)))

        def kt_fp(tm, tk_):
            nck = 2 if tk_ % 256 == 0 else 1
            return (2 * tm * self.d_in_p * cd                # x (dbl-buf)
                    + 2 * self.d_in_p * tk_ * cd             # W1 block (dbl-buf)
                    + 2 * tk_ * self.d_out_p * cd            # W2 block (dbl-buf)
                    + 3 * tm * self.d_out_p * 4              # out dbl-buf + f32 acc
                    + tm * (tk_ // nck) * 4                  # f32 h chunk
                    + 2 * (tk_ + self.d_out_p) * 4)          # biases

        if not self.weights_resident:
            while kt_fp(self.tile_m, tk) > budget:
                new_tk = _pick_chunk(self.d_hid_p, max(128, tk // 2))
                if new_tk >= tk:
                    break
                tk = new_tk
            while kt_fp(self.tile_m, tk) > budget and self.tile_m > 2 * self.sublane:
                self.tile_m = _round_up(self.tile_m // 2, self.sublane)
        self.tile_k = tk
        self._kt_nchunks = 2 if tk % 256 == 0 else 1

        # ---- pad + cast parameters ONCE (out of the per-call hot path) -------
        def pad2(a, rows, cols):
            pr, pc = rows - a.shape[0], cols - a.shape[1]
            return jnp.pad(a, ((0, pr), (0, pc))) if (pr or pc) else a

        self.w1p = pad2(w1_t, self.d_in_p, self.d_hid_p).astype(self.compute_dtype)
        self.w2p = pad2(w2_t, self.d_hid_p, self.d_out_p).astype(self.compute_dtype)
        self.b1p = pad2(b1.reshape(1, -1).astype(jnp.float32), 1, self.d_hid_p)
        self.b2p = pad2(b2.reshape(1, -1).astype(jnp.float32), 1, self.d_out_p)

    # ------------------------------------------------------------------ call
    def __call__(self, x):
        orig_shape = x.shape
        assert orig_shape[-1] == self.d_in
        out_dtype = x.dtype
        x2d = x.reshape(-1, self.d_in)
        M = x2d.shape[0]

        # Per-call row tiling: clamp for tiny M; ensure at least num_cores M
        # tiles so neither TensorCore idles on v7x.
        tm = min(self.tile_m, _round_up(M, self.sublane))
        while self.num_cores > 1 and _cdiv(M, tm) < self.num_cores and tm >= 2 * self.sublane:
            tm = _round_up(tm // 2, self.sublane)
        M_p = _round_up(M, tm)
        n_m = M_p // tm

        pad_m, pad_d = M_p - M, self.d_in_p - self.d_in
        if pad_m or pad_d:
            x2d = jnp.pad(x2d, ((0, pad_m), (0, pad_d)))
        xp = x2d if x2d.dtype == self.compute_dtype else x2d.astype(self.compute_dtype)

        if self.weights_resident:
            try:
                call = self._build_resident(tm, n_m, M_p, out_dtype, single_buffer=True)
                out2d = call(xp, self.w1p, self.b1p, self.w2p, self.b2p)
            except Exception:
                # Fallback if single-buffered weights (pl.Buffered(1)) are not
                # supported by this jax / Mosaic version.
                call = self._build_resident(tm, n_m, M_p, out_dtype, single_buffer=False)
                out2d = call(xp, self.w1p, self.b1p, self.w2p, self.b2p)
        else:
            call = self._build_ktiled(tm, n_m, M_p, out_dtype)
            out2d = call(xp, self.w1p, self.b1p, self.w2p, self.b2p)

        return out2d[:M, :self.d_out].reshape(*orig_shape[:-1], self.d_out)

    # --------------------------------------------------------------- builders
    def _build_resident(self, tm, n_m, M_p, out_dtype, single_buffer):
        d_in_p, d_hid_p, d_out_p = self.d_in_p, self.d_hid_p, self.d_out_p
        cd = self.compute_dtype.itemsize
        wkw = {}
        if single_buffer and _HAS_BUFFERED:
            wkw = dict(pipeline_mode=pl.Buffered(1))   # constant block -> no double buffer
        cost = pl.CostEstimate(
            flops=2 * M_p * (d_in_p * d_hid_p + d_hid_p * d_out_p),
            transcendentals=0,
            bytes_accessed=int(M_p * d_in_p * cd
                               + M_p * d_out_p * jnp.dtype(out_dtype).itemsize
                               + (d_in_p * d_hid_p + d_hid_p * d_out_p) * cd   # weights once
                               + (d_hid_p + d_out_p) * 4))
        return pl.pallas_call(
            _make_resident_kernel(self._res_nchunks, self._res_chunk),
            out_shape=jax.ShapeDtypeStruct((M_p, d_out_p), out_dtype),
            grid=(n_m,),
            in_specs=[
                pl.BlockSpec((tm, d_in_p), lambda i: (i, 0)),          # x rows
                pl.BlockSpec((d_in_p, d_hid_p), lambda i: (0, 0), **wkw),  # W1 (resident)
                pl.BlockSpec((1, d_hid_p), lambda i: (0, 0)),          # b1
                pl.BlockSpec((d_hid_p, d_out_p), lambda i: (0, 0), **wkw),  # W2 (resident)
                pl.BlockSpec((1, d_out_p), lambda i: (0, 0)),          # b2
            ],
            out_specs=pl.BlockSpec((tm, d_out_p), lambda i: (i, 0)),
            compiler_params=pltpu.CompilerParams(
                dimension_semantics=("parallel",),
                vmem_limit_bytes=self.vmem_limit),
            cost_estimate=cost,
        )

    def _build_ktiled(self, tm, n_m, M_p, out_dtype):
        d_in_p, d_hid_p, d_out_p = self.d_in_p, self.d_hid_p, self.d_out_p
        tk = self.tile_k
        cd = self.compute_dtype.itemsize
        cost = pl.CostEstimate(
            flops=2 * M_p * (d_in_p * d_hid_p + d_hid_p * d_out_p),
            transcendentals=0,
            # Weights are re-streamed once per M tile in this path.
            bytes_accessed=int(M_p * d_in_p * cd
                               + M_p * d_out_p * jnp.dtype(out_dtype).itemsize
                               + n_m * ((d_in_p * d_hid_p + d_hid_p * d_out_p) * cd
                                        + (d_hid_p + d_out_p) * 4)))
        return pl.pallas_call(
            _make_ktiled_kernel(self._kt_nchunks, tk // self._kt_nchunks),
            out_shape=jax.ShapeDtypeStruct((M_p, d_out_p), out_dtype),
            grid=(n_m, d_hid_p // tk),                 # reduction (hidden) axis last
            in_specs=[
                pl.BlockSpec((tm, d_in_p), lambda i, k: (i, 0)),     # x rows
                pl.BlockSpec((d_in_p, tk), lambda i, k: (0, k)),     # W1 block
                pl.BlockSpec((1, tk), lambda i, k: (0, k)),          # b1 block
                pl.BlockSpec((tk, d_out_p), lambda i, k: (k, 0)),    # W2 block
                pl.BlockSpec((1, d_out_p), lambda i, k: (0, 0)),     # b2 (grid-invariant)
            ],
            out_specs=pl.BlockSpec((tm, d_out_p), lambda i, k: (i, 0)),
            scratch_shapes=[pltpu.VMEM((tm, d_out_p), jnp.float32)],
            compiler_params=pltpu.CompilerParams(
                dimension_semantics=("parallel", "arbitrary"),
                vmem_limit_bytes=self.vmem_limit),
            cost_estimate=cost,
        )


def init_linear_params(key, in_features, out_features, dtype=jnp.float32):
    """Matches torch.nn.Linear default init U(-1/sqrt(in), 1/sqrt(in))."""
    kw, kb = jax.random.split(key)
    bound = 1.0 / math.sqrt(in_features)
    # torch stores weight as (out, in); we keep the transposed (in, out) form.
    w_t = jax.random.uniform(kw, (in_features, out_features), dtype,
                             minval=-bound, maxval=bound)
    b = jax.random.uniform(kb, (out_features,), dtype,
                           minval=-bound, maxval=bound)
    return w_t, b


if __name__ == "__main__":
    key = jax.random.PRNGKey(0)
    k_x, k_l1, k_l2, k_xb, k_l3, k_l4 = jax.random.split(key, 6)

    # ---- config 1: the module's toy shapes (weights-resident fast path) -----
    batch, seq = 2, 8
    ffn_num_input, ffn_num_hiddens, ffn_num_outputs = 32, 64, 32
    x = jax.random.normal(k_x, (batch, seq, ffn_num_input), jnp.float32)
    w1_t, b1 = init_linear_params(k_l1, ffn_num_input, ffn_num_hiddens)
    w2_t, b2 = init_linear_params(k_l2, ffn_num_hiddens, ffn_num_outputs)
    ref = jnp.maximum(x @ w1_t + b1, 0.0) @ w2_t + b2

    # f32 compute path: strict check against the pure-JAX reference.
    ffn_f32 = PositionWiseFFN(w1_t, b1, w2_t, b2, compute_dtype=jnp.float32)
    out_f32 = jax.block_until_ready(ffn_f32(x))
    assert out_f32.shape == (batch, seq, ffn_num_outputs)
    assert jnp.allclose(out_f32, ref, atol=1e-5, rtol=1e-5)

    # default bf16 matmul path (f32 MXU accumulation): looser numeric tolerance.
    ffn_bf16 = PositionWiseFFN(w1_t, b1, w2_t, b2)
    out_bf16 = jax.block_until_ready(ffn_bf16(x))
    assert out_bf16.shape == (batch, seq, ffn_num_outputs)
    assert jnp.allclose(out_bf16, ref, atol=5e-2, rtol=5e-2)

    # ---- config 2: ragged shapes exercise padding / clamped tiling ----------
    batch_b, seq_b = 3, 5
    d_in_b, d_hid_b, d_out_b = 48, 100, 40
    x_b = jax.random.normal(k_xb, (batch_b, seq_b, d_in_b), jnp.float32)
    w1_b, b1_b = init_linear_params(k_l3, d_in_b, d_hid_b)
    w2_b, b2_b = init_linear_params(k_l4, d_hid_b, d_out_b)
    ref_b = jnp.maximum(x_b @ w1_b + b1_b, 0.0) @ w2_b + b2_b
    out_b = jax.block_until_ready(
        PositionWiseFFN(w1_b, b1_b, w2_b, b2_b, compute_dtype=jnp.float32)(x_b))
    assert out_b.shape == (batch_b, seq_b, d_out_b)
    assert jnp.allclose(out_b, ref_b, atol=1e-5, rtol=1e-5)

    # ---- config 3: force the K-tiled accumulator path (huge-weight path) ----
    ffn_kt = PositionWiseFFN(w1_t, b1, w2_t, b2, compute_dtype=jnp.float32,
                             weights_resident=False)
    out_kt = jax.block_until_ready(ffn_kt(x))
    assert out_kt.shape == (batch, seq, ffn_num_outputs)
    assert jnp.allclose(out_kt, ref, atol=1e-5, rtol=1e-5)

    print("KERNEL_OK")
</pallas_src>

<mosaic_0001>
module attributes {stable_mosaic.version = 11 : i64} {
  func.func @kernel(%arg0: i32, %arg1: memref<16x128xf32, #tpu.memory_space<vmem>>, %arg2: memref<128x128xf32, #tpu.memory_space<vmem>>, %arg3: memref<1x128xf32, #tpu.memory_space<vmem>>, %arg4: memref<128x128xf32, #tpu.memory_space<vmem>>, %arg5: memref<1x128xf32, #tpu.memory_space<vmem>>, %arg6: memref<16x128xf32, #tpu.memory_space<vmem>>) attributes {dimension_semantics = [#tpu.dimension_semantics<parallel>], iteration_bounds = array<i64: 1>, scalar_prefetch = 0 : i64, scratch_operands = 0 : i64, tpu.core_type = #tpu.core_type<tc>, window_params = [{transform_indices = @transform_0, window_bounds = array<i64: 16, 128>}, {pipeline_mode = #tpu.pipeline_mode<synchronous>, transform_indices = @transform_1, window_bounds = array<i64: 128, 128>}, {pipeline_mode = #tpu.pipeline_mode<synchronous>, transform_indices = @transform_2, window_bounds = array<i64: 1, 128>}, {pipeline_mode = #tpu.pipeline_mode<synchronous>, transform_indices = @transform_3, window_bounds = array<i64: 128, 128>}, {pipeline_mode = #tpu.pipeline_mode<synchronous>, transform_indices = @transform_4, window_bounds = array<i64: 1, 128>}, {transform_indices = @transform_5, window_bounds = array<i64: 16, 128>}]} {
    %c0 = arith.constant 0 : index
    %c0_0 = arith.constant 0 : index
    %0 = vector.load %arg1[%c0, %c0_0] : memref<16x128xf32, #tpu.memory_space<vmem>>, vector<16x128xf32>
    %cst = arith.constant 0.000000e+00 : f32
    %1 = vector.broadcast %cst : f32 to vector<16x128xf32>
    %c0_1 = arith.constant 0 : index
    %c0_2 = arith.constant 0 : index
    %2 = vector.load %arg2[%c0_1, %c0_2] : memref<128x128xf32, #tpu.memory_space<vmem>>, vector<128x128xf32>
    %cst_3 = arith.constant dense<0.000000e+00> : vector<16x128xf32>
    %3 = tpu.matmul %0, %2, %cst_3 {dimension_numbers = #tpu.dot_dimension_numbers<[1], [0], [0], [1], [0, 0, 1, 1], [], []>} : vector<16x128xf32>, vector<128x128xf32>, vector<16x128xf32> -> vector<16x128xf32>
    %c0_4 = arith.constant 0 : index
    %c0_5 = arith.constant 0 : index
    %4 = vector.load %arg3[%c0_4, %c0_5] : memref<1x128xf32, #tpu.memory_space<vmem>>, vector<1x128xf32>
    %5 = vector.broadcast %4 : vector<1x128xf32> to vector<16x128xf32>
    %6 = arith.addf %3, %5 : vector<16x128xf32>
    %cst_6 = arith.constant 0.000000e+00 : f32
    %7 = vector.broadcast %cst_6 : f32 to vector<16x128xf32>
    %8 = arith.maximumf %6, %7 : vector<16x128xf32>
    %c0_7 = arith.constant 0 : index
    %c0_8 = arith.constant 0 : index
    %9 = vector.load %arg4[%c0_7, %c0_8] : memref<128x128xf32, #tpu.memory_space<vmem>>, vector<128x128xf32>
    %cst_9 = arith.constant dense<0.000000e+00> : vector<16x128xf32>
    %10 = tpu.matmul %8, %9, %cst_9 {dimension_numbers = #tpu.dot_dimension_numbers<[1], [0], [0], [1], [0, 0, 1, 1], [], []>} : vector<16x128xf32>, vector<128x128xf32>, vector<16x128xf32> -> vector<16x128xf32>
    %11 = arith.addf %1, %10 : vector<16x128xf32>
    %c0_10 = arith.constant 0 : index
    %c0_11 = arith.constant 0 : index
    %12 = vector.load %arg5[%c0_10, %c0_11] : memref<1x128xf32, #tpu.memory_space<vmem>>, vector<1x128xf32>
    %13 = vector.broadcast %12 : vector<1x128xf32> to vector<16x128xf32>
    %14 = arith.addf %11, %13 : vector<16x128xf32>
    %c0_12 = arith.constant 0 : index
    %c0_13 = arith.constant 0 : index
    %15 = vector.load %arg6[%c0_12, %c0_13] : memref<16x128xf32, #tpu.memory_space<vmem>>, vector<16x128xf32>
    tpu.vector_store %arg6[%c0_12, %c0_13], %14 {strides = array<i32>} : memref<16x128xf32, #tpu.memory_space<vmem>>, vector<16x128xf32>,
    return
  }
  func.func @transform_0(%arg0: i32) -> (i32, i32) {
    %c0_i32 = arith.constant 0 : i32
    %c0_i32_0 = arith.constant 0 : i32
    return %arg0, %c0_i32 : i32, i32
  }
  func.func @transform_1(%arg0: i32) -> (i32, i32) {
    %c0_i32 = arith.constant 0 : i32
    %c0_i32_0 = arith.constant 0 : i32
    %c0_i32_1 = arith.constant 0 : i32
    return %c0_i32, %c0_i32_0 : i32, i32
  }
  func.func @transform_2(%arg0: i32) -> (i32, i32) {
    %c0_i32 = arith.constant 0 : i32
    %c0_i32_0 = arith.constant 0 : i32
    %c0_i32_1 = arith.constant 0 : i32
    return %c0_i32, %c0_i32_0 : i32, i32
  }
  func.func @transform_3(%arg0: i32) -> (i32, i32) {
    %c0_i32 = arith.constant 0 : i32
    %c0_i32_0 = arith.constant 0 : i32
    %c0_i32_1 = arith.constant 0 : i32
    return %c0_i32, %c0_i32_0 : i32, i32
  }
  func.func @transform_4(%arg0: i32) -> (i32, i32) {
    %c0_i32 = arith.constant 0 : i32
    %c0_i32_0 = arith.constant 0 : i32
    %c0_i32_1 = arith.constant 0 : i32
    return %c0_i32, %c0_i32_0 : i32, i32
  }
  func.func @transform_5(%arg0: i32) -> (i32, i32) {
    %c0_i32 = arith.constant 0 : i32
    %c0_i32_0 = arith.constant 0 : i32
    return %arg0, %c0_i32 : i32, i32
  }
}

module attributes {stable_mosaic.version = 11 : i64} {
  func.func @kernel(%arg0: i32, %arg1: memref<16x128xf32, #tpu.memory_space<vmem>>, %arg2: memref<128x128xf32, #tpu.memory_space<vmem>>, %arg3: memref<1x128xf32, #tpu.memory_space<vmem>>, %arg4: memref<128x128xf32, #tpu.memory_space<vmem>>, %arg5: memref<1x128xf32, #tpu.memory_space<vmem>>, %arg6: memref<16x128xf32, #tpu.memory_space<vmem>>) attributes {dimension_semantics = [#tpu.dimension_semantics<parallel>], iteration_bounds = array<i64: 1>, scalar_prefetch = 0 : i64, scratch_operands = 0 : i64, tpu.core_type = #tpu.core_type<tc>, window_params = [{transform_indices = @transform_0, window_bounds = array<i64: 16, 128>}, {pipeline_mode = #tpu.pipeline_mode<synchronous>, transform_indices = @transform_1, window_bounds = array<i64: 128, 128>}, {pipeline_mode = #tpu.pipeline_mode<synchronous>, transform_indices = @transform_2, window_bounds = array<i64: 1, 128>}, {pipeline_mode = #tpu.pipeline_mode<synchronous>, transform_indices = @transform_3, window_bounds = array<i64: 128, 128>}, {pipeline_mode = #tpu.pipeline_mode<synchronous>, transform_indices = @transform_4, window_bounds = array<i64: 1, 128>}, {transform_indices = @transform_5, window_bounds = array<i64: 16, 128>}]} {
    %c0 = arith.constant 0 : index
    %c0_0 = arith.constant 0 : index
    %0 = vector.load %arg1[%c0, %c0_0] : memref<16x128xf32, #tpu.memory_space<vmem>>, vector<16x128xf32>
    %cst = arith.constant 0.000000e+00 : f32
    %1 = vector.broadcast %cst : f32 to vector<16x128xf32>
    %c0_1 = arith.constant 0 : index
    %c0_2 = arith.constant 0 : index
    %2 = vector.load %arg2[%c0_1, %c0_2] : memref<128x128xf32, #tpu.memory_space<vmem>>, vector<128x128xf32>
    %cst_3 = arith.constant dense<0.000000e+00> : vector<16x128xf32>
    %3 = tpu.matmul %0, %2, %cst_3 {dimension_numbers = #tpu.dot_dimension_numbers<[1], [0], [0], [1], [0, 0, 1, 1], [], []>} : vector<16x128xf32>, vector<128x128xf32>, vector<16x128xf32> -> vector<16x128xf32>
    %c0_4 = arith.constant 0 : index
    %c0_5 = arith.constant 0 : index
    %4 = vector.load %arg3[%c0_4, %c0_5] : memref<1x128xf32, #tpu.memory_space<vmem>>, vector<1x128xf32>
    %5 = vector.broadcast %4 : vector<1x128xf32> to vector<16x128xf32>
    %6 = arith.addf %3, %5 : vector<16x128xf32>
    %cst_6 = arith.constant 0.000000e+00 : f32
    %7 = vector.broadcast %cst_6 : f32 to vector<16x128xf32>
    %8 = arith.maximumf %6, %7 : vector<16x128xf32>
    %c0_7 = arith.constant 0 : index
    %c0_8 = arith.constant 0 : index
    %9 = vector.load %arg4[%c0_7, %c0_8] : memref<128x128xf32, #tpu.memory_space<vmem>>, vector<128x128xf32>
    %cst_9 = arith.constant dense<0.000000e+00> : vector<16x128xf32>
    %10 = tpu.matmul %8, %9, %cst_9 {dimension_numbers = #tpu.dot_dimension_numbers<[1], [0], [0], [1], [0, 0, 1, 1], [], []>} : vector<16x128xf32>, vector<128x128xf32>, vector<16x128xf32> -> vector<16x128xf32>
    %11 = arith.addf %1, %10 : vector<16x128xf32>
    %c0_10 = arith.constant 0 : index
    %c0_11 = arith.constant 0 : index
    %12 = vector.load %arg5[%c0_10, %c0_11] : memref<1x128xf32, #tpu.memory_space<vmem>>, vector<1x128xf32>
    %13 = vector.broadcast %12 : vector<1x128xf32> to vector<16x128xf32>
    %14 = arith.addf %11, %13 : vector<16x128xf32>
    %c0_12 = arith.constant 0 : index
    %c0_13 = arith.constant 0 : index
    %15 = vector.load %arg6[%c0_12, %c0_13] : memref<16x128xf32, #tpu.memory_space<vmem>>, vector<16x128xf32>
    tpu.vector_store %arg6[%c0_12, %c0_13], %14 {strides = array<i32>} : memref<16x128xf32, #tpu.memory_space<vmem>>, vector<16x128xf32>,
    return
  }
  func.func @transform_0(%arg0: i32) -> (i32, i32) {
    %c0_i32 = arith.constant 0 : i32
    %c0_i32_0 = arith.constant 0 : i32
    return %arg0, %c0_i32 : i32, i32
  }
  func.func @transform_1(%arg0: i32) -> (i32, i32) {
    %c0_i32 = arith.constant 0 : i32
    %c0_i32_0 = arith.constant 0 : i32
    %c0_i32_1 = arith.constant 0 : i32
    return %c0_i32, %c0_i32_0 : i32, i32
  }
  func.func @transform_2(%arg0: i32) -> (i32, i32) {
    %c0_i32 = arith.constant 0 : i32
    %c0_i32_0 = arith.constant 0 : i32
    %c0_i32_1 = arith.constant 0 : i32
    return %c0_i32, %c0_i32_0 : i32, i32
  }
  func.func @transform_3(%arg0: i32) -> (i32, i32) {
    %c0_i32 = arith.constant 0 : i32
    %c0_i32_0 = arith.constant 0 : i32
    %c0_i32_1 = arith.constant 0 : i32
    return %c0_i32, %c0_i32_0 : i32, i32
  }
  func.func @transform_4(%arg0: i32) -> (i32, i32) {
    %c0_i32 = arith.constant 0 : i32
    %c0_i32_0 = arith.constant 0 : i32
    %c0_i32_1 = arith.constant 0 : i32
    return %c0_i32, %c0_i32_0 : i32, i32
  }
  func.func @transform_5(%arg0: i32) -> (i32, i32) {
    %c0_i32 = arith.constant 0 : i32
    %c0_i32_0 = arith.constant 0 : i32
    return %arg0, %c0_i32 : i32, i32
  }
}

</mosaic_0001>

<bundles_post_ra>
// kernel: tpu_custom_call.1
= control target key start
LH: loop header
LB: loop body
LE: loop exit
PB: predicated region body
PF: predicated region fallthrough
CT: control target
= control target key end

     0   :  { %10 = vsyncpa [#allocation3], 0  ;;  %s388_s0 = inlined_call_operand.hbm [shape: f32[16,128], index: 0, kind: input, shape index: {}]   ;;  %s389_s1 = inlined_call_operand.hbm [shape: f32[128,128], index: 1, kind: input, shape index: {}]   ;;  %s390_s2 = inlined_call_operand.vmem [shape: f32[1,128], index: 2, kind: input, shape index: {}]   ;;  %s391_s3 = inlined_call_operand.hbm [shape: f32[128,128], index: 3, kind: input, shape index: {}]   ;;  %s392_s4 = inlined_call_operand.vmem [shape: f32[1,128], index: 4, kind: input, shape index: {}]   ;;  %s393_s5 = inlined_call_operand.hbm [shape: f32[16,128], index: 5, kind: output, shape index: {}]  }
   0x1   :  { %11 = vsyncpa [#allocation6], 0 }
   0x2   :  { %12 = vsyncpa [#allocation4], 0  ;;  %s30_s20 = sshll.u32 %s389_s1, 4  ;;  %s322_s21 = smov [#allocation5]   ;;  %s31_s20 = int_to_ptr.hbm [resolvable:$true] %s30_s20 }
   0x3   :  { %s32_s22 = sshll.u32 %s322_s21, 4  ;;  %s17_s25 = sshll.u32 %s388_s0, 4  ;;  %s33_s22 = int_to_ptr.vmem [resolvable:$true] %s32_s22  ;;  %s18_s25 = int_to_ptr.hbm [resolvable:$true] %s17_s25 }
   0x4   :  { %s323_s26 = smov 128   ;;  %s324_s27 = smov 8  }
   0x5   :  { %38 = dma.hbm_to_vmem [thread:$0]  %s31_s20, 2048, %s33_s22, [#allocation6], %s323_s26, %s323_s26, %s324_s27  }
   0x6   :  { %s325_s28 = smov [#allocation2]   ;;  %s45_s1 = sshll.u32 %s391_s3, 4  ;;  %s46_s1 = int_to_ptr.hbm [resolvable:$true] %s45_s1 }
   0x7   :  { %s19_s29 = sshll.u32 %s325_s28, 4  ;;  %s326_s0 = smov [#allocation7]   ;;  %s20_s29 = int_to_ptr.vmem [resolvable:$true] %s19_s29 }
   0x8   :  { %25 = dma.hbm_to_vmem [thread:$0]  %s18_s25, 256, %s20_s29, [#allocation3], %s323_s26, %s323_s26, %s324_s27  }
   0x9   :  { %s47_s7 = sshll.u32 %s326_s0, 4  ;;  %s48_s7 = int_to_ptr.vmem [resolvable:$true] %s47_s7 }
   0xa   :  { %53 = dma.hbm_to_vmem [thread:$0]  %s46_s1, 2048, %s48_s7, [#allocation6], %s323_s26, %s323_s26, %s324_s27  }
   0xb   :  { %316 = dma.done.wait [#allocation3], 256  }
   0xc   :  { %317 = vsyncadd [#allocation3], 4294967040 }
   0xd   :  { %318 = dma.done.wait [#allocation6], 4096  }
   0xe   :  { %319 = vsyncadd [#allocation6], 4294963200  ;;  %v85_v0 = vld [vmem:[#allocation5 + $0x78] sm:$0xff]  ;;  %v84_v1 = vld [vmem:[#allocation5 + $0x70] sm:$0xff]  ;;  %s327_s11 = smov [#allocation8]  }
   0xf   :  { %180 = vmatpush.msra.mxu2 %v85_v0  ;;  %90 = vmatpush.msra.mxu0 %v85_v0  ;;  %v83_v2 = vld [vmem:[#allocation5 + $0x68] sm:$0xff]  ;;  %v82_v3 = vld [vmem:[#allocation5 + $0x60] sm:$0xff]  ;;  %v81_v4 = vld [vmem:[#allocation5 + $0x58] sm:$0xff]  ;;  %s164_s12 = sshll.u32 %s327_s11, 4  ;;  %s165_s12 = int_to_ptr.vmem [resolvable:$true] %s164_s12 }
  0x10   :  { %v130_v5 = vld [vmem:[#allocation7 + $0x78] sm:$0xff]  ;;  %v129_v6 = vld [vmem:[#allocation7 + $0x70] sm:$0xff]  ;;  %v128_v8 = vld [vmem:[#allocation7 + $0x68] sm:$0xff] }
  0x11   :  { %181 = vmatpush.msra.mxu2 %v84_v1  ;;  %91 = vmatpush.msra.mxu0 %v84_v1  ;;  %v80_v7 = vld [vmem:[#allocation5 + $0x50] sm:$0xff]  ;;  %v79_v9 = vld [vmem:[#allocation5 + $0x48] sm:$0xff]  ;;  %v127_v10 = vld [vmem:[#allocation7 + $0x60] sm:$0xff] }
  0x12   :  { %196 = vmatpush.msra.mxu3 %v130_v5  ;;  %135 = vmatpush.msra.mxu1 %v130_v5  ;;  %v78_v11 = vld [vmem:[#allocation5 + $0x40] sm:$0xff]  ;;  %v126_v12 = vld [vmem:[#allocation7 + $0x58] sm:$0xff]  ;;  %v125_v14 = vld [vmem:[#allocation7 + $0x50] sm:$0xff] }
  0x13   :  { %182 = vmatpush.msra.mxu2 %v83_v2  ;;  %92 = vmatpush.msra.mxu0 %v83_v2  ;;  %v77_v13 = vld [vmem:[#allocation5 + $0x38] sm:$0xff]  ;;  %v76_v15 = vld [vmem:[#allocation5 + $0x30] sm:$0xff]  ;;  %v124_v16 = vld [vmem:[#allocation7 + $0x48] sm:$0xff] }
  0x14   :  { %197 = vmatpush.msra.mxu3 %v129_v6  ;;  %136 = vmatpush.msra.mxu1 %v129_v6  ;;  %v75_v17 = vld [vmem:[#allocation5 + $0x28] sm:$0xff]  ;;  %v123_v18 = vld [vmem:[#allocation7 + $0x40] sm:$0xff]  ;;  %v122_v20 = vld [vmem:[#allocation7 + $0x38] sm:$0xff] }
  0x15   :  { %183 = vmatpush.msra.mxu2 %v82_v3  ;;  %93 = vmatpush.msra.mxu0 %v82_v3  ;;  %v74_v19 = vld [vmem:[#allocation5 + $0x20] sm:$0xff]  ;;  %v73_v21 = vld [vmem:[#allocation5 + $0x18] sm:$0xff]  ;;  %v121_v22 = vld [vmem:[#allocation7 + $0x30] sm:$0xff] }
  0x16   :  { %198 = vmatpush.msra.mxu3 %v128_v8  ;;  %137 = vmatpush.msra.mxu1 %v128_v8  ;;  %v72_v23 = vld [vmem:[#allocation5 + $0x10] sm:$0xff]  ;;  %v120_v24 = vld [vmem:[#allocation7 + $0x28] sm:$0xff]  ;;  %v119_v26 = vld [vmem:[#allocation7 + $0x20] sm:$0xff] }
  0x17   :  { %184 = vmatpush.msra.mxu2 %v81_v4  ;;  %94 = vmatpush.msra.mxu0 %v81_v4  ;;  %v71_v25 = vld [vmem:[#allocation5 + $0x8] sm:$0xff]  ;;  %v70_v27 = vld [vmem:[#allocation5] sm:$0xff]  ;;  %v69_v28 = vld [vmem:[#allocation2 + $0x8] sm:$0xff] }
  0x18   :  { %199 = vmatpush.msra.mxu3 %v127_v10  ;;  %138 = vmatpush.msra.mxu1 %v127_v10  ;;  %v68_v29 = vld [vmem:[#allocation2] sm:$0xff]  ;;  %v118_v30 = vld [vmem:[#allocation7 + $0x18] sm:$0xff]  ;;  %v116_v32 = vld [vmem:[#allocation7 + $0x8] sm:$0xff] }
  0x19   :  { %185 = vmatpush.msra.mxu2 %v80_v7  ;;  %95 = vmatpush.msra.mxu0 %v80_v7  ;;  %v117_v31 = vld [vmem:[#allocation7 + $0x10] sm:$0xff]  ;;  %v115_v33 = vld [vmem:[#allocation7] sm:$0xff] }
  0x1a   :  { %200 = vmatpush.msra.mxu3 %v126_v12  ;;  %139 = vmatpush.msra.mxu1 %v126_v12  ;;  %v218_v34 = vld [vmem:[%s390_s2] ss:$0 sm:$0xff]  ;;  %s166_s2 = sshll.u32 %s393_s5, 4  ;;  %s167_s2 = int_to_ptr.hbm [resolvable:$true] %s166_s2 }
  0x1b   :  { %186 = vmatpush.msra.mxu2 %v79_v9  ;;  %96 = vmatpush.msra.mxu0 %v79_v9  ;;  %v219_v41 = vld [vmem:[%s392_s4] ss:$0 sm:$0xff] }
  0x1c   :  { %201 = vmatpush.msra.mxu3 %v125_v14  ;;  %140 = vmatpush.msra.mxu1 %v125_v14 }
  0x1d   :  { %187 = vmatpush.msra.mxu2 %v78_v11  ;;  %97 = vmatpush.msra.mxu0 %v78_v11 }
  0x1e   :  { %202 = vmatpush.msra.mxu3 %v124_v16  ;;  %141 = vmatpush.msra.mxu1 %v124_v16 }
  0x1f   :  { %188 = vmatpush.msra.mxu2 %v77_v13  ;;  %98 = vmatpush.msra.mxu0 %v77_v13 }
  0x20   :  { %203 = vmatpush.msra.mxu3 %v123_v18  ;;  %142 = vmatpush.msra.mxu1 %v123_v18 }
  0x21   :  { %189 = vmatpush.msra.mxu2 %v76_v15  ;;  %99 = vmatpush.msra.mxu0 %v76_v15 }
  0x22   :  { %204 = vmatpush.msra.mxu3 %v122_v20  ;;  %143 = vmatpush.msra.mxu1 %v122_v20 }
  0x23   :  { %190 = vmatpush.msra.mxu2 %v75_v17  ;;  %100 = vmatpush.msra.mxu0 %v75_v17 }
  0x24   :  { %205 = vmatpush.msra.mxu3 %v121_v22  ;;  %144 = vmatpush.msra.mxu1 %v121_v22 }
  0x25   :  { %191 = vmatpush.msra.mxu2 %v74_v19  ;;  %101 = vmatpush.msra.mxu0 %v74_v19 }
  0x26   :  { %206 = vmatpush.msra.mxu3 %v120_v24  ;;  %145 = vmatpush.msra.mxu1 %v120_v24 }
  0x27   :  { %192 = vmatpush.msra.mxu2 %v73_v21  ;;  %102 = vmatpush.msra.mxu0 %v73_v21 }
  0x28   :  { %207 = vmatpush.msra.mxu3 %v119_v26  ;;  %146 = vmatpush.msra.mxu1 %v119_v26 }
  0x29   :  { %193 = vmatpush.msra.mxu2 %v72_v23  ;;  %103 = vmatpush.msra.mxu0 %v72_v23 }
  0x2a   :  { %208 = vmatpush.msra.mxu3 %v118_v30  ;;  %147 = vmatpush.msra.mxu1 %v118_v30 }
  0x2b   :  { %194 = vmatpush.msra.mxu2 %v71_v25  ;;  %104 = vmatpush.msra.mxu0 %v71_v25 }
  0x2c   :  { %209 = vmatpush.msra.mxu3 %v117_v31  ;;  %148 = vmatpush.msra.mxu1 %v117_v31 }
  0x2d   :  { %195 = vmatpush.msra.mxu2 %v70_v27  ;;  %105 = vmatpush.msra.mxu0 %v70_v27 }
  0x2e   :  { %109 = vmatmul.f32.vlgmr.msra.gmra.mxu2 %v69_v28  ;;  %106 = vmatmul.f32.vlgmr.msra.gmra.mxu0 %v68_v29 }
  0x2f   :  { %210 = vmatpush.msra.mxu3 %v116_v32  ;;  %149 = vmatpush.msra.mxu1 %v116_v32 }
  0x31   :  { %211 = vmatpush.msra.mxu3 %v115_v33  ;;  %150 = vmatpush.msra.mxu1 %v115_v33 }
  0xab   :  { %v107_v35 = vpop.f32.mrf.mxu0 }
  0xac   :  { %v108_v36 = vadd.f32 %v218_v34, %v107_v35 }
  0xae   :  { %v113_v37 = vmax.f32 %v108_v36, 0.0 }
  0xb0   :  { %151 = vmatmul.f32.vlgmr.msra.gmra.mxu1 %v113_v37 }
  0xb1   :  { %v110_v38 = vpop.f32.mrf.mxu2 }
  0xb2   :  { %v111_v39 = vadd.f32 %v218_v34, %v110_v38 }
  0xb4   :  { %v114_v40 = vmax.f32 %v111_v39, 0.0 }
  0xb6   :  { %154 = vmatmul.f32.vlgmr.msra.gmra.mxu3 %v114_v40 }
 0x12d   :  { %v152_v42 = vpop.f32.mrf.mxu1 }
 0x12e   :  { %v153_v43 = vadd.f32 %v219_v41, %v152_v42 }
 0x130   :  { %158 = vst [vmem:[#allocation8] sm:$0xff] %v153_v43 }
 0x139   :  { %v155_v44 = vpop.f32.mrf.mxu3 }
 0x13a   :  { %v156_v45 = vadd.f32 %v219_v41, %v155_v44 }
 0x13c   :  { %159 = vst [vmem:[#allocation8 + $0x8] sm:$0xff] %v156_v45 }
 0x13d   :  { %172 = dma.vmem_to_hbm [thread:$0]  %s165_s12, 256, %s167_s2, [#allocation4], %s323_s26, %s323_s26, %s324_s27  }
 0x13e   :  { %320 = dma.done.wait [#allocation4], 256  }
 0x13f   :  { %321 = vsyncadd [#allocation4], 4294967040 }
 0x140   :  { %177 = vsyncpa [#allocation3], 1 }
 0x141   :  { %178 = vsyncpa [#allocation6], 1 }
 0x142   :  { %179 = vsyncpa [#allocation4], 1 }

// kernel: tpu_custom_call.1
= control target key start
LH: loop header
LB: loop body
LE: loop exit
PB: predicated region body
PF: predicated region fallthrough
CT: control target
= control target key end

     0   :  { %10 = vsyncpa [#allocation3], 0  ;;  %s388_s0 = inlined_call_operand.hbm [shape: f32[16,128], index: 0, kind: input, shape index: {}]   ;;  %s389_s1 = inlined_call_operand.hbm [shape: f32[128,128], index: 1, kind: input, shape index: {}]   ;;  %s390_s2 = inlined_call_operand.vmem [shape: f32[1,128], index: 2, kind: input, shape index: {}]   ;;  %s391_s3 = inlined_call_operand.hbm [shape: f32[128,128], index: 3, kind: input, shape index: {}]   ;;  %s392_s4 = inlined_call_operand.vmem [shape: f32[1,128], index: 4, kind: input, shape index: {}]   ;;  %s393_s5 = inlined_call_operand.hbm [shape: f32[16,128], index: 5, kind: output, shape index: {}]  }
   0x1   :  { %11 = vsyncpa [#allocation6], 0 }
   0x2   :  { %12 = vsyncpa [#allocation4], 0  ;;  %s30_s20 = sshll.u32 %s389_s1, 4  ;;  %s322_s21 = smov [#allocation5]   ;;  %s31_s20 = int_to_ptr.hbm [resolvable:$true] %s30_s20 }
   0x3   :  { %s32_s22 = sshll.u32 %s322_s21, 4  ;;  %s17_s25 = sshll.u32 %s388_s0, 4  ;;  %s33_s22 = int_to_ptr.vmem [resolvable:$true] %s32_s22  ;;  %s18_s25 = int_to_ptr.hbm [resolvable:$true] %s17_s25 }
   0x4   :  { %s323_s26 = smov 128   ;;  %s324_s27 = smov 8  }
   0x5   :  { %38 = dma.hbm_to_vmem [thread:$0]  %s31_s20, 2048, %s33_s22, [#allocation6], %s323_s26, %s323_s26, %s324_s27  }
   0x6   :  { %s325_s28 = smov [#allocation2]   ;;  %s45_s1 = sshll.u32 %s391_s3, 4  ;;  %s46_s1 = int_to_ptr.hbm [resolvable:$true] %s45_s1 }
   0x7   :  { %s19_s29 = sshll.u32 %s325_s28, 4  ;;  %s326_s0 = smov [#allocation7]   ;;  %s20_s29 = int_to_ptr.vmem [resolvable:$true] %s19_s29 }
   0x8   :  { %25 = dma.hbm_to_vmem [thread:$0]  %s18_s25, 256, %s20_s29, [#allocation3], %s323_s26, %s323_s26, %s324_s27  }
   0x9   :  { %s47_s7 = sshll.u32 %s326_s0, 4  ;;  %s48_s7 = int_to_ptr.vmem [resolvable:$true] %s47_s7 }
   0xa   :  { %53 = dma.hbm_to_vmem [thread:$0]  %s46_s1, 2048, %s48_s7, [#allocation6], %s323_s26, %s323_s26, %s324_s27  }
   0xb   :  { %316 = dma.done.wait [#allocation3], 256  }
   0xc   :  { %317 = vsyncadd [#allocation3], 4294967040 }
   0xd   :  { %318 = dma.done.wait [#allocation6], 4096  }
   0xe   :  { %319 = vsyncadd [#allocation6], 4294963200  ;;  %v85_v0 = vld [vmem:[#allocation5 + $0x78] sm:$0xff]  ;;  %v84_v1 = vld [vmem:[#allocation5 + $0x70] sm:$0xff]  ;;  %s327_s11 = smov [#allocation8]  }
   0xf   :  { %180 = vmatpush.msra.mxu2 %v85_v0  ;;  %90 = vmatpush.msra.mxu0 %v85_v0  ;;  %v83_v2 = vld [vmem:[#allocation5 + $0x68] sm:$0xff]  ;;  %v82_v3 = vld [vmem:[#allocation5 + $0x60] sm:$0xff]  ;;  %v81_v4 = vld [vmem:[#allocation5 + $0x58] sm:$0xff]  ;;  %s164_s12 = sshll.u32 %s327_s11, 4  ;;  %s165_s12 = int_to_ptr.vmem [resolvable:$true] %s164_s12 }
  0x10   :  { %v130_v5 = vld [vmem:[#allocation7 + $0x78] sm:$0xff]  ;;  %v129_v6 = vld [vmem:[#allocation7 + $0x70] sm:$0xff]  ;;  %v128_v8 = vld [vmem:[#allocation7 + $0x68] sm:$0xff] }
  0x11   :  { %181 = vmatpush.msra.mxu2 %v84_v1  ;;  %91 = vmatpush.msra.mxu0 %v84_v1  ;;  %v80_v7 = vld [vmem:[#allocation5 + $0x50] sm:$0xff]  ;;  %v79_v9 = vld [vmem:[#allocation5 + $0x48] sm:$0xff]  ;;  %v127_v10 = vld [vmem:[#allocation7 + $0x60] sm:$0xff] }
  0x12   :  { %196 = vmatpush.msra.mxu3 %v130_v5  ;;  %135 = vmatpush.msra.mxu1 %v130_v5  ;;  %v78_v11 = vld [vmem:[#allocation5 + $0x40] sm:$0xff]  ;;  %v126_v12 = vld [vmem:[#allocation7 + $0x58] sm:$0xff]  ;;  %v125_v14 = vld [vmem:[#allocation7 + $0x50] sm:$0xff] }
  0x13   :  { %182 = vmatpush.msra.mxu2 %v83_v2  ;;  %92 = vmatpush.msra.mxu0 %v83_v2  ;;  %v77_v13 = vld [vmem:[#allocation5 + $0x38] sm:$0xff]  ;;  %v76_v15 = vld [vmem:[#allocation5 + $0x30] sm:$0xff]  ;;  %v124_v16 = vld [vmem:[#allocation7 + $0x48] sm:$0xff] }
  0x14   :  { %197 = vmatpush.msra.mxu3 %v129_v6  ;;  %136 = vmatpush.msra.mxu1 %v129_v6  ;;  %v75_v17 = vld [vmem:[#allocation5 + $0x28] sm:$0xff]  ;;  %v123_v18 = vld [vmem:[#allocation7 + $0x40] sm:$0xff]  ;;  %v122_v20 = vld [vmem:[#allocation7 + $0x38] sm:$0xff] }
  0x15   :  { %183 = vmatpush.msra.mxu2 %v82_v3  ;;  %93 = vmatpush.msra.mxu0 %v82_v3  ;;  %v74_v19 = vld [vmem:[#allocation5 + $0x20] sm:$0xff]  ;;  %v73_v21 = vld [vmem:[#allocation5 + $0x18] sm:$0xff]  ;;  %v121_v22 = vld [vmem:[#allocation7 + $0x30] sm:$0xff] }
  0x16   :  { %198 = vmatpush.msra.mxu3 %v128_v8  ;;  %137 = vmatpush.msra.mxu1 %v128_v8  ;;  %v72_v23 = vld [vmem:[#allocation5 + $0x10] sm:$0xff]  ;;  %v120_v24 = vld [vmem:[#allocation7 + $0x28] sm:$0xff]  ;;  %v119_v26 = vld [vmem:[#allocation7 + $0x20] sm:$0xff] }
  0x17   :  { %184 = vmatpush.msra.mxu2 %v81_v4  ;;  %94 = vmatpush.msra.mxu0 %v81_v4  ;;  %v71_v25 = vld [vmem:[#allocation5 + $0x8] sm:$0xff]  ;;  %v70_v27 = vld [vmem:[#allocation5] sm:$0xff]  ;;  %v69_v28 = vld [vmem:[#allocation2 + $0x8] sm:$0xff] }
  0x18   :  { %199 = vmatpush.msra.mxu3 %v127_v10  ;;  %138 = vmatpush.msra.mxu1 %v127_v10  ;;  %v68_v29 = vld [vmem:[#allocation2] sm:$0xff]  ;;  %v118_v30 = vld [vmem:[#allocation7 + $0x18] sm:$0xff]  ;;  %v116_v32 = vld [vmem:[#allocation7 + $0x8] sm:$0xff] }
  0x19   :  { %185 = vmatpush.msra.mxu2 %v80_v7  ;;  %95 = vmatpush.msra.mxu0 %v80_v7  ;;  %v117_v31 = vld [vmem:[#allocation7 + $0x10] sm:$0xff]  ;;  %v115_v33 = vld [vmem:[#allocation7] sm:$0xff] }
  0x1a   :  { %200 = vmatpush.msra.mxu3 %v126_v12  ;;  %139 = vmatpush.msra.mxu1 %v126_v12  ;;  %v218_v34 = vld [vmem:[%s390_s2] ss:$0 sm:$0xff]  ;;  %s166_s2 = sshll.u32 %s393_s5, 4  ;;  %s167_s2 = int_to_ptr.hbm [resolvable:$true] %s166_s2 }
  0x1b   :  { %186 = vmatpush.msra.mxu2 %v79_v9  ;;  %96 = vmatpush.msra.mxu0 %v79_v9  ;;  %v219_v41 = vld [vmem:[%s392_s4] ss:$0 sm:$0xff] }
  0x1c   :  { %201 = vmatpush.msra.mxu3 %v125_v14  ;;  %140 = vmatpush.msra.mxu1 %v125_v14 }
  0x1d   :  { %187 = vmatpush.msra.mxu2 %v78_v11  ;;  %97 = vmatpush.msra.mxu0 %v78_v11 }
  0x1e   :  { %202 = vmatpush.msra.mxu3 %v124_v16  ;;  %141 = vmatpush.msra.mxu1 %v124_v16 }
  0x1f   :  { %188 = vmatpush.msra.mxu2 %v77_v13  ;;  %98 = vmatpush.msra.mxu0 %v77_v13 }
  0x20   :  { %203 = vmatpush.msra.mxu3 %v123_v18  ;;  %142 = vmatpush.msra.mxu1 %v123_v18 }
  0x21   :  { %189 = vmatpush.msra.mxu2 %v76_v15  ;;  %99 = vmatpush.msra.mxu0 %v76_v15 }
  0x22   :  { %204 = vmatpush.msra.mxu3 %v122_v20  ;;  %143 = vmatpush.msra.mxu1 %v122_v20 }
  0x23   :  { %190 = vmatpush.msra.mxu2 %v75_v17  ;;  %100 = vmatpush.msra.mxu0 %v75_v17 }
  0x24   :  { %205 = vmatpush.msra.mxu3 %v121_v22  ;;  %144 = vmatpush.msra.mxu1 %v121_v22 }
  0x25   :  { %191 = vmatpush.msra.mxu2 %v74_v19  ;;  %101 = vmatpush.msra.mxu0 %v74_v19 }
  0x26   :  { %206 = vmatpush.msra.mxu3 %v120_v24  ;;  %145 = vmatpush.msra.mxu1 %v120_v24 }
  0x27   :  { %192 = vmatpush.msra.mxu2 %v73_v21  ;;  %102 = vmatpush.msra.mxu0 %v73_v21 }
  0x28   :  { %207 = vmatpush.msra.mxu3 %v119_v26  ;;  %146 = vmatpush.msra.mxu1 %v119_v26 }
  0x29   :  { %193 = vmatpush.msra.mxu2 %v72_v23  ;;  %103 = vmatpush.msra.mxu0 %v72_v23 }
  0x2a   :  { %208 = vmatpush.msra.mxu3 %v118_v30  ;;  %147 = vmatpush.msra.mxu1 %v118_v30 }
  0x2b   :  { %194 = vmatpush.msra.mxu2 %v71_v25  ;;  %104 = vmatpush.msra.mxu0 %v71_v25 }
  0x2c   :  { %209 = vmatpush.msra.mxu3 %v117_v31  ;;  %148 = vmatpush.msra.mxu1 %v117_v31 }
  0x2d   :  { %195 = vmatpush.msra.mxu2 %v70_v27  ;;  %105 = vmatpush.msra.mxu0 %v70_v27 }
  0x2e   :  { %109 = vmatmul.f32.vlgmr.msra.gmra.mxu2 %v69_v28  ;;  %106 = vmatmul.f32.vlgmr.msra.gmra.mxu0 %v68_v29 }
  0x2f   :  { %210 = vmatpush.msra.mxu3 %v116_v32  ;;  %149 = vmatpush.msra.mxu1 %v116_v32 }
  0x31   :  { %211 = vmatpush.msra.mxu3 %v115_v33  ;;  %150 = vmatpush.msra.mxu1 %v115_v33 }
  0xab   :  { %v107_v35 = vpop.f32.mrf.mxu0 }
  0xac   :  { %v108_v36 = vadd.f32 %v218_v34, %v107_v35 }
  0xae   :  { %v113_v37 = vmax.f32 %v108_v36, 0.0 }
  0xb0   :  { %151 = vmatmul.f32.vlgmr.msra.gmra.mxu1 %v113_v37 }
  0xb1   :  { %v110_v38 = vpop.f32.mrf.mxu2 }
  0xb2   :  { %v111_v39 = vadd.f32 %v218_v34, %v110_v38 }
  0xb4   :  { %v114_v40 = vmax.f32 %v111_v39, 0.0 }
  0xb6   :  { %154 = vmatmul.f32.vlgmr.msra.gmra.mxu3 %v114_v40 }
 0x12d   :  { %v152_v42 = vpop.f32.mrf.mxu1 }
 0x12e   :  { %v153_v43 = vadd.f32 %v219_v41, %v152_v42 }
 0x130   :  { %158 = vst [vmem:[#allocation8] sm:$0xff] %v153_v43 }
 0x139   :  { %v155_v44 = vpop.f32.mrf.mxu3 }
 0x13a   :  { %v156_v45 = vadd.f32 %v219_v41, %v155_v44 }
 0x13c   :  { %159 = vst [vmem:[#allocation8 + $0x8] sm:$0xff] %v156_v45 }
 0x13d   :  { %172 = dma.vmem_to_hbm [thread:$0]  %s165_s12, 256, %s167_s2, [#allocation4], %s323_s26, %s323_s26, %s324_s27  }
 0x13e   :  { %320 = dma.done.wait [#allocation4], 256  }
 0x13f   :  { %321 = vsyncadd [#allocation4], 4294967040 }
 0x140   :  { %177 = vsyncpa [#allocation3], 1 }
 0x141   :  { %178 = vsyncpa [#allocation6], 1 }
 0x142   :  { %179 = vsyncpa [#allocation4], 1 }

</bundles_post_ra>
